<compile_context>
chip_gen: v7x
topology: tpu7x:2x2x1
jax: 0.10.0
libtpu: 0.0.40
codegen_flags: <defaults>
</compile_context>

<pallas_src>
import functools

import jax
import jax.numpy as jnp
from jax.experimental import pallas as pl
from jax.experimental.pallas import tpu as pltpu

NEG_SLOPE = 0.01   # nn.LeakyReLU default
BN_EPS = 1e-5      # nn.BatchNorm1d default
TILE_N = 128       # lane-dense feature tile (multiple of 128)


def _uniform_bits(seed_u32, tile_idx, shape, n_total):
    """Stateless uint32 hash per (row, global col): murmur3-style finalizer."""
    rows = jax.lax.broadcasted_iota(jnp.int32, shape, 0)
    cols = jax.lax.broadcasted_iota(jnp.int32, shape, 1) + tile_idx * shape[1]
    idx = (rows * n_total + cols).astype(jnp.uint32)
    h = idx ^ (seed_u32 * jnp.uint32(0x9E3779B9))
    h = h ^ (h >> 16)
    h = h * jnp.uint32(0x85EBCA6B)
    h = h ^ (h >> 13)
    h = h * jnp.uint32(0xC2B2AE35)
    h = h ^ (h >> 16)
    return h


def lbd_kernel(seed_ref, x_ref, wt_ref, b_ref, gamma_ref, beta_ref, o_ref,
               *, drop_p, batch_flag, training, n_pad):
    j = pl.program_id(0)

    # ---- Linear: (B, Din)bf16 @ (Din, TILE_N)bf16 -> f32 accumulate on the MXU ----
    y = jnp.dot(x_ref[...], wt_ref[...], preferred_element_type=jnp.float32)
    y = y + b_ref[...]                                 # (B, TILE_N) + (1, TILE_N)

    # ---- LeakyReLU (one mul + one max) ----
    y = jnp.maximum(y, NEG_SLOPE * y)

    # ---- BatchNorm1d (training: biased batch stats), folded into scale/shift ----
    if batch_flag:
        mean = jnp.mean(y, axis=0, keepdims=True)
        centered = y - mean
        var = jnp.mean(centered * centered, axis=0, keepdims=True)
        scale = gamma_ref[...] * jax.lax.rsqrt(var + BN_EPS)   # (1, TILE_N)
        shift = beta_ref[...] - mean * scale                   # (1, TILE_N)
    else:
        scale = None
        shift = None

    # ---- Dropout (training): integer-threshold keep mask, 1/(1-p) folded in ----
    if training and drop_p > 0.0:
        inv_keep = 1.0 / (1.0 - drop_p)
        if scale is not None:
            y = y * (scale * inv_keep) + (shift * inv_keep)    # single fused pass
        else:
            y = y * inv_keep
        bits = _uniform_bits(seed_ref[0].astype(jnp.uint32), j, y.shape, n_pad)
        thresh = jnp.uint32(min(int(round(drop_p * 4294967296.0)), 0xFFFFFFFF))
        y = jnp.where(bits >= thresh, y, 0.0)
    else:
        if scale is not None:
            y = y * scale + shift

    o_ref[...] = y.astype(o_ref.dtype)


def prepare_params(w, b, gamma, beta):
    """One-time param prep: transpose weight to (Din, Dout), pad Dout to a
    multiple of TILE_N (lane-dense), cast weight to bf16 for the MXU."""
    d_out, d_in = w.shape
    n_pad = pl.cdiv(d_out, TILE_N) * TILE_N
    pad = n_pad - d_out
    wt = jnp.pad(w.T.astype(jnp.float32), ((0, 0), (0, pad))).astype(jnp.bfloat16)
    b2 = jnp.pad(b.astype(jnp.float32), (0, pad)).reshape(1, n_pad)
    g2 = jnp.pad(gamma.astype(jnp.float32), (0, pad)).reshape(1, n_pad)
    bt2 = jnp.pad(beta.astype(jnp.float32), (0, pad)).reshape(1, n_pad)
    return wt, b2, g2, bt2, d_out


def lbd_forward(x, wt, b2, g2, bt2, d_out, seed, *, drop_p, batch_flag,
                training=True):
    """x: (B, Din); wt: (Din, N_pad) bf16; b2/g2/bt2: (1, N_pad) f32."""
    B, d_in = x.shape
    n_pad = wt.shape[1]

    x_bf = x.astype(jnp.bfloat16)
    seed_arr = jnp.array([seed], dtype=jnp.int32)

    kernel = functools.partial(
        lbd_kernel, drop_p=float(drop_p), batch_flag=bool(batch_flag),
        training=bool(training), n_pad=int(n_pad))

    out = pl.pallas_call(
        kernel,
        out_shape=jax.ShapeDtypeStruct((B, n_pad), jnp.float32),
        grid_spec=pltpu.PrefetchScalarGridSpec(
            num_scalar_prefetch=1,
            grid=(n_pad // TILE_N,),
            in_specs=[
                pl.BlockSpec((B, d_in), lambda j, s: (0, 0)),       # full batch
                pl.BlockSpec((d_in, TILE_N), lambda j, s: (0, j)),  # weight tile
                pl.BlockSpec((1, TILE_N), lambda j, s: (0, j)),     # bias
                pl.BlockSpec((1, TILE_N), lambda j, s: (0, j)),     # gamma
                pl.BlockSpec((1, TILE_N), lambda j, s: (0, j)),     # beta
            ],
            out_specs=pl.BlockSpec((B, TILE_N), lambda j, s: (0, j)),
        ),
        compiler_params=pltpu.CompilerParams(
            dimension_semantics=("parallel",)),
    )(seed_arr, x_bf, wt, b2, g2, bt2)

    return out[:, :d_out]


def init_params(key, input_size, output_size):
    """Deterministic init matching LBDLayer.__init__ shapes/scheme."""
    kw, kb = jax.random.split(key)
    # kaiming_normal_ (fan_in, leaky_relu a=0) => std = sqrt(2 / fan_in)
    w = jax.random.normal(kw, (output_size, input_size), jnp.float32) * jnp.sqrt(
        2.0 / input_size)
    # nn.Linear default bias: U(-1/sqrt(fan_in), 1/sqrt(fan_in))
    bound = 1.0 / jnp.sqrt(float(input_size))
    b = jax.random.uniform(kb, (output_size,), jnp.float32, -bound, bound)
    # BatchNorm1d defaults
    gamma = jnp.ones((output_size,), jnp.float32)
    beta = jnp.zeros((output_size,), jnp.float32)
    return w, b, gamma, beta


# TODO(synk): BatchNorm running_mean/running_var are not tracked/updated, and
# eval mode would need them; only the training-mode forward math is implemented.

if __name__ == "__main__":
    batch = 8
    input_size = 32
    output_size = 64
    drop_p = 0.1
    batch_flag = True

    key = jax.random.PRNGKey(0)
    kx, kp = jax.random.split(key)
    x = jax.random.normal(kx, (batch, input_size), jnp.float32)
    w, b, gamma, beta = init_params(kp, input_size, output_size)

    # Param prep (transpose/pad/cast) happens once, outside the forward pass.
    wt, b2, g2, bt2, d_out = prepare_params(w, b, gamma, beta)

    out = lbd_forward(x, wt, b2, g2, bt2, d_out, seed=1234,
                      drop_p=drop_p, batch_flag=batch_flag, training=True)
    jax.block_until_ready(out)
    assert out.shape == (batch, output_size)
    assert bool(jnp.all(jnp.isfinite(out)))
    print("KERNEL_OK")
</pallas_src>

<mosaic_0001>
module attributes {stable_mosaic.version = 11 : i64} {
  func.func @lbd_kernel(%arg0: i32, %arg1: memref<1xi32, #tpu.memory_space<smem>>, %arg2: memref<8x32xbf16, #tpu.memory_space<vmem>>, %arg3: memref<32x128xbf16, #tpu.memory_space<vmem>>, %arg4: memref<1x128xf32, #tpu.memory_space<vmem>>, %arg5: memref<1x128xf32, #tpu.memory_space<vmem>>, %arg6: memref<1x128xf32, #tpu.memory_space<vmem>>, %arg7: memref<8x128xf32, #tpu.memory_space<vmem>>) attributes {dimension_semantics = [#tpu.dimension_semantics<parallel>], iteration_bounds = array<i64: 1>, scalar_prefetch = 1 : i64, scratch_operands = 0 : i64, tpu.core_type = #tpu.core_type<tc>, window_params = [{pipeline_mode = #tpu.pipeline_mode<synchronous>, transform_indices = @transform_0, window_bounds = array<i64: 8, 32>}, {transform_indices = @transform_1, window_bounds = array<i64: 32, 128>}, {transform_indices = @transform_2, window_bounds = array<i64: 1, 128>}, {transform_indices = @transform_3, window_bounds = array<i64: 1, 128>}, {transform_indices = @transform_4, window_bounds = array<i64: 1, 128>}, {transform_indices = @transform_5, window_bounds = array<i64: 8, 128>}]} {
    %c0 = arith.constant 0 : index
    %c0_0 = arith.constant 0 : index
    %0 = vector.load %arg2[%c0, %c0_0] : memref<8x32xbf16, #tpu.memory_space<vmem>>, vector<8x32xbf16>
    %c0_1 = arith.constant 0 : index
    %c0_2 = arith.constant 0 : index
    %1 = vector.load %arg3[%c0_1, %c0_2] : memref<32x128xbf16, #tpu.memory_space<vmem>>, vector<32x128xbf16>
    %cst = arith.constant dense<0.000000e+00> : vector<8x128xf32>
    %2 = tpu.matmul %0, %1, %cst {dimension_numbers = #tpu.dot_dimension_numbers<[1], [0], [0], [1], [0, 0, 1, 1], [], []>} : vector<8x32xbf16>, vector<32x128xbf16>, vector<8x128xf32> -> vector<8x128xf32>
    %c0_3 = arith.constant 0 : index
    %c0_4 = arith.constant 0 : index
    %3 = vector.load %arg4[%c0_3, %c0_4] : memref<1x128xf32, #tpu.memory_space<vmem>>, vector<1x128xf32>
    %4 = vector.broadcast %3 : vector<1x128xf32> to vector<8x128xf32>
    %5 = arith.addf %2, %4 : vector<8x128xf32>
    %cst_5 = arith.constant 0.00999999977 : f32
    %6 = vector.broadcast %cst_5 : f32 to vector<8x128xf32>
    %7 = arith.mulf %6, %5 : vector<8x128xf32>
    %8 = arith.maximumf %5, %7 : vector<8x128xf32>
    %cst_6 = arith.constant dense<0.000000e+00> : vector<128xf32>
    %9 = vector.multi_reduction <add>, %8, %cst_6 [0] : vector<8x128xf32> to vector<128xf32>
    %10 = vector.shape_cast %9 : vector<128xf32> to vector<1x128xf32>
    %cst_7 = arith.constant 8.000000e+00 : f32
    %11 = vector.broadcast %cst_7 : f32 to vector<1x128xf32>
    %12 = arith.divf %10, %11 : vector<1x128xf32>
    %13 = vector.broadcast %12 : vector<1x128xf32> to vector<8x128xf32>
    %14 = arith.subf %8, %13 : vector<8x128xf32>
    %15 = arith.mulf %14, %14 : vector<8x128xf32>
    %cst_8 = arith.constant dense<0.000000e+00> : vector<128xf32>
    %16 = vector.multi_reduction <add>, %15, %cst_8 [0] : vector<8x128xf32> to vector<128xf32>
    %17 = vector.shape_cast %16 : vector<128xf32> to vector<1x128xf32>
    %cst_9 = arith.constant 8.000000e+00 : f32
    %18 = vector.broadcast %cst_9 : f32 to vector<1x128xf32>
    %19 = arith.divf %17, %18 : vector<1x128xf32>
    %c0_10 = arith.constant 0 : index
    %c0_11 = arith.constant 0 : index
    %20 = vector.load %arg5[%c0_10, %c0_11] : memref<1x128xf32, #tpu.memory_space<vmem>>, vector<1x128xf32>
    %cst_12 = arith.constant 9.99999974E-6 : f32
    %21 = vector.broadcast %cst_12 : f32 to vector<1x128xf32>
    %22 = arith.addf %19, %21 : vector<1x128xf32>
    %23 = math.rsqrt %22 : vector<1x128xf32>
    %24 = arith.mulf %20, %23 : vector<1x128xf32>
    %c0_13 = arith.constant 0 : index
    %c0_14 = arith.constant 0 : index
    %25 = vector.load %arg6[%c0_13, %c0_14] : memref<1x128xf32, #tpu.memory_space<vmem>>, vector<1x128xf32>
    %26 = arith.mulf %12, %24 : vector<1x128xf32>
    %27 = arith.subf %25, %26 : vector<1x128xf32>
    %cst_15 = arith.constant 1.11111116 : f32
    %28 = vector.broadcast %cst_15 : f32 to vector<1x128xf32>
    %29 = arith.mulf %24, %28 : vector<1x128xf32>
    %30 = vector.broadcast %29 : vector<1x128xf32> to vector<8x128xf32>
    %31 = arith.mulf %8, %30 : vector<8x128xf32>
    %cst_16 = arith.constant 1.11111116 : f32
    %32 = vector.broadcast %cst_16 : f32 to vector<1x128xf32>
    %33 = arith.mulf %27, %32 : vector<1x128xf32>
    %34 = vector.broadcast %33 : vector<1x128xf32> to vector<8x128xf32>
    %35 = arith.addf %31, %34 : vector<8x128xf32>
    %c0_17 = arith.constant 0 : index
    %36 = memref.load %arg1[%c0_17] : memref<1xi32, #tpu.memory_space<smem>>
    %37 = tpu.iota {dimensions = array<i32: 0>} : vector<8x128xi32>
    %38 = tpu.iota {dimensions = array<i32: 1>} : vector<8x128xi32>
    %c128_i32 = arith.constant 128 : i32
    %39 = arith.muli %arg0, %c128_i32 : i32
    %40 = vector.broadcast %39 : i32 to vector<8x128xi32>
    %41 = arith.addi %38, %40 : vector<8x128xi32>
    %c128_i32_18 = arith.constant 128 : i32
    %42 = vector.broadcast %c128_i32_18 : i32 to vector<8x128xi32>
    %43 = arith.muli %37, %42 : vector<8x128xi32>
    %44 = arith.addi %43, %41 : vector<8x128xi32>
    %c-1640531527_i32 = arith.constant -1640531527 : i32
    %45 = arith.muli %36, %c-1640531527_i32 : i32
    %46 = vector.broadcast %45 : i32 to vector<8x128xi32>
    %47 = arith.xori %44, %46 : vector<8x128xi32>
    %c16_i32 = arith.constant 16 : i32
    %48 = vector.broadcast %c16_i32 : i32 to vector<8x128xi32>
    %49 = arith.shrui %47, %48 : vector<8x128xi32>
    %50 = arith.xori %47, %49 : vector<8x128xi32>
    %c-2048144789_i32 = arith.constant -2048144789 : i32
    %51 = vector.broadcast %c-2048144789_i32 : i32 to vector<8x128xi32>
    %52 = arith.muli %50, %51 : vector<8x128xi32>
    %c13_i32 = arith.constant 13 : i32
    %53 = vector.broadcast %c13_i32 : i32 to vector<8x128xi32>
    %54 = arith.shrui %52, %53 : vector<8x128xi32>
    %55 = arith.xori %52, %54 : vector<8x128xi32>
    %c-1028477387_i32 = arith.constant -1028477387 : i32
    %56 = vector.broadcast %c-1028477387_i32 : i32 to vector<8x128xi32>
    %57 = arith.muli %55, %56 : vector<8x128xi32>
    %c16_i32_19 = arith.constant 16 : i32
    %58 = vector.broadcast %c16_i32_19 : i32 to vector<8x128xi32>
    %59 = arith.shrui %57, %58 : vector<8x128xi32>
    %60 = arith.xori %57, %59 : vector<8x128xi32>
    %c429496730_i32 = arith.constant 429496730 : i32
    %61 = vector.broadcast %c429496730_i32 : i32 to vector<8x128xi32>
    %62 = arith.cmpi uge, %60, %61 : vector<8x128xi32>
    %cst_20 = arith.constant 0.000000e+00 : f32
    %63 = vector.broadcast %cst_20 : f32 to vector<8x128xf32>
    %64 = arith.select %62, %35, %63 : vector<8x128xi1>, vector<8x128xf32>
    %c0_21 = arith.constant 0 : index
    %c0_22 = arith.constant 0 : index
    %65 = vector.load %arg7[%c0_21, %c0_22] : memref<8x128xf32, #tpu.memory_space<vmem>>, vector<8x128xf32>
    tpu.vector_store %arg7[%c0_21, %c0_22], %64 {strides = array<i32>} : memref<8x128xf32, #tpu.memory_space<vmem>>, vector<8x128xf32>,
    return
  }
  func.func @transform_0(%arg0: i32, %arg1: memref<1xi32, #tpu.memory_space<smem>>) -> (i32, i32) {
    %c0_i32 = arith.constant 0 : i32
    %c0_i32_0 = arith.constant 0 : i32
    %c0_i32_1 = arith.constant 0 : i32
    return %c0_i32, %c0_i32_0 : i32, i32
  }
  func.func @transform_1(%arg0: i32, %arg1: memref<1xi32, #tpu.memory_space<smem>>) -> (i32, i32) {
    %c0_i32 = arith.constant 0 : i32
    %c0_i32_0 = arith.constant 0 : i32
    return %c0_i32, %arg0 : i32, i32
  }
  func.func @transform_2(%arg0: i32, %arg1: memref<1xi32, #tpu.memory_space<smem>>) -> (i32, i32) {
    %c0_i32 = arith.constant 0 : i32
    %c0_i32_0 = arith.constant 0 : i32
    return %c0_i32, %arg0 : i32, i32
  }
  func.func @transform_3(%arg0: i32, %arg1: memref<1xi32, #tpu.memory_space<smem>>) -> (i32, i32) {
    %c0_i32 = arith.constant 0 : i32
    %c0_i32_0 = arith.constant 0 : i32
    return %c0_i32, %arg0 : i32, i32
  }
  func.func @transform_4(%arg0: i32, %arg1: memref<1xi32, #tpu.memory_space<smem>>) -> (i32, i32) {
    %c0_i32 = arith.constant 0 : i32
    %c0_i32_0 = arith.constant 0 : i32
    return %c0_i32, %arg0 : i32, i32
  }
  func.func @transform_5(%arg0: i32, %arg1: memref<1xi32, #tpu.memory_space<smem>>) -> (i32, i32) {
    %c0_i32 = arith.constant 0 : i32
    %c0_i32_0 = arith.constant 0 : i32
    return %c0_i32, %arg0 : i32, i32
  }
}

</mosaic_0001>

<bundles_post_ra>
// kernel: tpu_custom_call.1
= control target key start
LH: loop header
LB: loop body
LE: loop exit
PB: predicated region body
PF: predicated region fallthrough
CT: control target
= control target key end

     0   :  { %12 = vsyncpa [#allocation5], 0  ;;  %s395_s0 = inlined_call_operand.<no memory space> [shape: s32[1], index: 0, kind: input, shape index: {}]   ;;  %s396_s1 = inlined_call_operand.hbm [shape: bf16[8,32], index: 1, kind: input, shape index: {}]   ;;  %s397_s2 = inlined_call_operand.hbm [shape: bf16[32,128], index: 2, kind: input, shape index: {}]   ;;  %s398_s3 = inlined_call_operand.vmem [shape: f32[1,128], index: 3, kind: input, shape index: {}]   ;;  %s399_s4 = inlined_call_operand.vmem [shape: f32[1,128], index: 4, kind: input, shape index: {}]   ;;  %s400_s5 = inlined_call_operand.vmem [shape: f32[1,128], index: 5, kind: input, shape index: {}]   ;;  %s401_s6 = inlined_call_operand.hbm [shape: f32[8,128], index: 6, kind: output, shape index: {}]  }
   0x1   :  { %13 = vsyncpa [#allocation8], 0 }
   0x2   :  { %14 = vsyncpa [#allocation6], 0  ;;  %s298_s21 = smov [#allocation4]   ;;  %s299_s23 = smov [#allocation7]  }
   0x3   :  { %s21_s22 = sshll.u32 %s298_s21, 4  ;;  %s30_s24 = sshll.u32 %s299_s23, 4  ;;  %s22_s22 = int_to_ptr.vmem [resolvable:$true] %s21_s22  ;;  %s340_s24 = int_to_ptr.vmem [resolvable:$true] %s30_s24 }
   0x4   :  { %s226_s27 = scalar_lea.hbm %s396_s1, 64 }
   0x5   :  { %p227_p0 = scmp.ne.s32.totalorder %s396_s1, %s226_s27  ;;  %p230_p1 = scmp.lt.u32.totalorder %s226_s27, %s396_s1 }
   0x7   :  { %p232_p2 = pnand %p230_p1, %p227_p0 }
   0x9   :  { %235 = shalt.err (!%p232_p2)
}
   0xa   :  { %s236_s8 = scalar_lea.vmem %s22_s22, 64  ;;  %p241_p4 = scmp.lt.s32.totalorder %s22_s22, %s22_s22 }
   0xb   :  { %p237_p3 = scmp.ne.s32.totalorder %s22_s22, %s236_s8  ;;  %p242_p5 = scmp.lt.s32.totalorder %s236_s8, %s236_s8 }
   0xd   :  { %p243_p6 = por %p242_p5, %p241_p4 }
   0xf   :  { %p244_p7 = pnand %p243_p6, %p237_p3 }
  0x11   :  { %247 = shalt.err (!%p244_p7)
}
  0x12   :  { %24 = dma.hbm_to_vmem [thread:$0]  %s396_s1, 64, %s22_s22, [#allocation5]  }
  0x13   :  { %s248_s13 = scalar_lea.hbm %s397_s2, 256 }
  0x14   :  { %p249_p8 = scmp.ne.s32.totalorder %s397_s2, %s248_s13  ;;  %p252_p9 = scmp.lt.u32.totalorder %s248_s13, %s397_s2 }
  0x16   :  { %p254_p10 = pnand %p252_p9, %p249_p8 }
  0x18   :  { %257 = shalt.err (!%p254_p10)
}
  0x19   :  { %s258_s18 = scalar_lea.vmem %s340_s24, 256  ;;  %p263_p12 = scmp.lt.s32.totalorder %s340_s24, %s340_s24 }
  0x1a   :  { %p259_p11 = scmp.ne.s32.totalorder %s340_s24, %s258_s18  ;;  %p264_p13 = scmp.lt.s32.totalorder %s258_s18, %s258_s18 }
  0x1c   :  { %p265_p0 = por %p264_p13, %p263_p12 }
  0x1e   :  { %p266_p1 = pnand %p265_p0, %p259_p11 }
  0x20   :  { %269 = shalt.err (!%p266_p1)
}
  0x21   :  { %s300_s1 = smov 64   ;;  %s301_s19 = smov 4  }
  0x22   :  { %36 = dma.hbm_to_vmem [thread:$0]  %s397_s2, 256, %s340_s24, [#allocation8], %s300_s1, %s300_s1, %s301_s19  }
  0x23   :  { %292 = dma.done.wait [#allocation5], 64  }
  0x24   :  { %293 = vsyncadd [#allocation5], 4294967232 }
  0x25   :  { %294 = dma.done.wait [#allocation8], 256  }
  0x26   :  { %295 = vsyncadd [#allocation8], 4294967040  ;;  %v302_v0 = vmov 0.0   ;;  %vm303_vm0 = vmmov 0   ;;  %v222_v1 = vld [vmem:[#allocation7] sm:$0xff]   ;;  %v223_v2 = vld [vmem:[#allocation7 + $0x8] sm:$0xff]   ;;  %v146_v14 = vlaneseq }
  0x27   :  { %207 = vmatprep.subr.bf16.mxu0 %v302_v0  ;;  %211 = vmatprep.mubr.msk.bf16.mxu0 %vm303_vm0, %v302_v0  ;;  %v50_v3 = vld [vmem:[#allocation4] sm:$0xf]  ;;  %vm74_vm1 = vcmask 261120   ;;  %s304_s28 = smov [#allocation9]  }
  0x28   :  { %208 = vmatpush3.bf16.msra.mxu0 %v222_v1  ;;  %v200_v4 = vld [vmem:[%s398_s3] ss:$0 sm:$0xff]  ;;  %v147_v17 = vshrl.u32 %v146_v14, 7  ;;  %v164_v20 = vand.u32 127, %v146_v14  ;;  %s170_s3 = smul.u32 2654435769, %s395_s0 }
  0x29   :  { %209 = vmatprep.subr.bf16.mxu0 %v302_v0  ;;  %v137_v41 = vld [vmem:[%s399_s4] sm:$0x1]  ;;  %s190_s29 = sshll.u32 %s304_s28, 4  ;;  %s191_s29 = int_to_ptr.vmem [resolvable:$true] %s190_s29 }
  0x2a   :  { %v168_v21 = vmul.u32 128, %v147_v17  ;;  %v171_v25 = vstv %s170_s3  ;;  %v148_v45 = vsub.s32 0, %v147_v17  ;;  %v141_v46 = vld [vmem:[%s400_s5] sm:$0x1]  ;;  %s270_s4 = scalar_lea.vmem %s191_s29, 128  ;;  %p275_p3 = scmp.lt.s32.totalorder %s191_s29, %s191_s29 }
  0x2b   :  { %p271_p2 = scmp.ne.s32.totalorder %s191_s29, %s270_s4  ;;  %p276_p4 = scmp.lt.s32.totalorder %s270_s4, %s270_s4 }
  0x2c   :  { %210 = vmatpush3.bf16.msra.mxu0 %v223_v2  ;;  %v169_v24 = vadd.s32 %v168_v21, %v164_v20 }
  0x2d   :  { %p277_p5 = por %p276_p4, %p275_p3 }
  0x2e   :  { %v172_v28 = vxor.u32 %v171_v25, %v169_v24 }
  0x2f   :  { %212 = vmatmul.mubr.msk.bf16.vlgmr.msra.gmra.mrb[0].mxu0 %vm74_vm1, %v50_v3  ;;  %p278_p6 = pnand %p277_p5, %p271_p2 }
  0x30   :  { %v173_v31 = vshrl.u32 %v172_v28, 16 }
  0x32   :  { %v174_v34 = vxor.u32 %v173_v31, %v172_v28 }
  0x34   :  { %v175_v37 = vmul.u32 2246822507, %v174_v34 }
  0x36   :  { %v176_v39 = vshrl.u32 %v175_v37, 13 }
  0x38   :  { %v177_v40 = vxor.u32 %v176_v39, %v175_v37 }
  0x3a   :  { %v178_v42 = vmul.u32 3266489909, %v177_v40 }
  0x3c   :  { %v179_v47 = vshrl.u32 %v178_v42, 16 }
  0x3e   :  { %v180_v52 = vxor.u32 %v179_v47, %v178_v42 }
  0x40   :  { %vm181_vm2 = vcmp.ge.u32.totalorder %v180_v52, 429496730 }
 0x102   :  { %v112_v5 = vpop.f32.mrb[0].mxu0 }
 0x103   :  { %v113_v6 = vadd.f32 %v200_v4, %v112_v5  ;;  %v213_v7 = vpop.f32.mrb[1].mxu0 }
 0x104   :  { %v115_v8 = vpop.f32.mrb[2].mxu0 }
 0x105   :  { %v118_v9 = vmul.f32 0.01, %v113_v6  ;;  %v214_v10 = vpop.f32.mrb[3].mxu0 }
 0x107   :  { %v119_v11 = vmax.f32 %v113_v6, %v118_v9 }
 0x109   :  { %v120_v12 = vrot.slane %v119_v11, 4 }
 0x10b   :  { %v121_v13 = vadd.f32 %v120_v12, %v119_v11 }
 0x10d   :  { %v122_v15 = vrot.slane %v121_v13, 2 }
 0x10f   :  { %v123_v16 = vadd.f32 %v122_v15, %v121_v13 }
 0x111   :  { %v124_v18 = vrot.slane %v123_v16, 1 }
 0x113   :  { %v125_v19 = vadd.f32 %v124_v18, %v123_v16 }
 0x115   :  { %v127_v22 = vmul.f32 0.125, %v125_v19 }
 0x117   :  { %v128_v23 = vsub.f32 %v119_v11, %v127_v22 }
 0x119   :  { %v129_v26 = vmul.f32 %v128_v23, %v128_v23 }
 0x11b   :  { %v130_v27 = vrot.slane %v129_v26, 4 }
 0x11d   :  { %v131_v29 = vadd.f32 %v130_v27, %v129_v26 }
 0x11f   :  { %v132_v30 = vrot.slane %v131_v29, 2 }
 0x121   :  { %v133_v32 = vadd.f32 %v132_v30, %v131_v29 }
 0x123   :  { %v134_v33 = vrot.slane %v133_v32, 1 }
 0x125   :  { %v135_v35 = vadd.f32 %v134_v33, %v133_v32 }
 0x127   :  { %v136_v36 = vmul.f32 0.125, %v135_v35 }
 0x129   :  { %v138_v38 = vadd.f32 1e-05, %v136_v36 }
 0x12b   :  { %224 = vrsqrt.f32 %v138_v38 }
 0x135   :  { %v225_v43 = vpop.eup %224 }
 0x136   :  { %v140_v44 = vmul.f32 %v225_v43, %v137_v41 }
 0x138   :  { %v142_v48 = vmul.f32 %v140_v44, %v127_v22  ;;  %v144_v49 = vmul.f32 1.1111112, %v140_v44 }
 0x13a   :  { %v143_v50 = vsub.f32 %v141_v46, %v142_v48  ;;  %v149_v51 = vrot.slane %v144_v49, %v148_v45 }
 0x13c   :  { %v152_v53 = vmul.f32 1.1111112, %v143_v50  ;;  %v151_v54 = vmul.f32 %v149_v51, %v119_v11 }
 0x13e   :  { %v157_v55 = vrot.slane %v152_v53, %v148_v45 }
 0x140   :  { %v159_v56 = vadd.f32 %v157_v55, %v151_v54 }
 0x142   :  { %v182_v57 = vsel %vm181_vm2, %v159_v56, 0.0 }
 0x143   :  { %183 = vst [vmem:[#allocation9] sm:$0xff] %v182_v57 }
 0x144   :  { %281 = shalt.err (!%p278_p6)
}
 0x145   :  { %s282_s7 = scalar_lea.hbm %s401_s6, 128 }
 0x146   :  { %p283_p7 = scmp.ne.s32.totalorder %s401_s6, %s282_s7  ;;  %p286_p8 = scmp.lt.u32.totalorder %s282_s7, %s401_s6 }
 0x148   :  { %p288_p9 = pnand %p286_p8, %p283_p7 }
 0x14a   :  { %291 = shalt.err (!%p288_p9)
}
 0x14b   :  { %193 = dma.vmem_to_hbm [thread:$0]  %s191_s29, 128, %s401_s6, [#allocation6]  }
 0x14c   :  { %296 = dma.done.wait [#allocation6], 128  }
 0x14d   :  { %297 = vsyncadd [#allocation6], 4294967168 }
 0x14e   :  { %197 = vsyncpa [#allocation5], 1 }
 0x14f   :  { %198 = vsyncpa [#allocation8], 1 }
 0x150   :  { %199 = vsyncpa [#allocation6], 1 }

</bundles_post_ra>
